<compile_context>
chip_gen: v6e
topology: v6e:2x2x1
jax: 0.10.0
libtpu: 0.0.40
codegen_flags: <defaults>
</compile_context>

<pallas_src>
import jax
import jax.numpy as jnp
from jax.experimental import pallas as pl
from jax.experimental.pallas import tpu as pltpu


def _scale_mul_kernel(scale_ref, x_ref, o_ref):
    # scale_ref: (C, 1) f32, x_ref: (C, HW) f32 -> broadcast multiply on the VPU.
    o_ref[...] = scale_ref[...] * x_ref[...]


def layer_scale_mul(scale, x):
    """scale: (C, 1, 1) float32, x: (N, C, H, W) float32 -> (N, C, H, W)."""
    n, c, h, w = x.shape
    assert n == 1, "module's input has batch 1"
    hw = h * w
    x2d = x.reshape(c, hw)   # contiguous view of NCHW; no data movement
    s2d = scale.reshape(c, 1)

    # in + out footprint; at (1024, 49) f32 this is ~0.4 MB -> single block.
    footprint = 2 * c * hw * x.dtype.itemsize
    if footprint <= 8 * 1024 * 1024:
        # Single invocation, whole arrays resident in VMEM, no grid/pipeline.
        out2d = pl.pallas_call(
            _scale_mul_kernel,
            out_shape=jax.ShapeDtypeStruct((c, hw), x.dtype),
            in_specs=[
                pl.BlockSpec(memory_space=pltpu.MemorySpace.VMEM),
                pl.BlockSpec(memory_space=pltpu.MemorySpace.VMEM),
            ],
            out_specs=pl.BlockSpec(memory_space=pltpu.MemorySpace.VMEM),
        )(s2d, x2d)
    else:
        # Fallback for much larger C*HW: big channel tiles (>=512 rows when
        # possible) to amortize per-step DMA/loop overhead.
        tc = 1024
        while c % tc != 0:
            tc //= 2
        out2d = pl.pallas_call(
            _scale_mul_kernel,
            out_shape=jax.ShapeDtypeStruct((c, hw), x.dtype),
            grid=(c // tc,),
            in_specs=[
                pl.BlockSpec((tc, 1), lambda i: (i, 0)),
                pl.BlockSpec((tc, hw), lambda i: (i, 0)),
            ],
            out_specs=pl.BlockSpec((tc, hw), lambda i: (i, 0)),
            compiler_params=pltpu.CompilerParams(
                dimension_semantics=("parallel",)
            ),
        )(s2d, x2d)

    return out2d.reshape(n, c, h, w)


if __name__ == "__main__":
    key = jax.random.PRNGKey(0)
    k1, k2 = jax.random.split(key)

    # Shapes from the module: x417 = randn([1, 1024, 7, 7]),
    # layer_scale35 = rand([1024, 1, 1]).
    x = jax.random.normal(k1, (1, 1024, 7, 7), dtype=jnp.float32)
    layer_scale = jax.random.uniform(k2, (1024, 1, 1), dtype=jnp.float32)

    out = layer_scale_mul(layer_scale, x)
    out = jax.block_until_ready(out)

    # Reference check (plain JAX broadcasting, same semantics as torch mul)
    ref = layer_scale[None, :, :, :] * x
    assert out.shape == (1, 1024, 7, 7)
    assert jnp.allclose(out, ref, atol=1e-6, rtol=1e-6)

    print("KERNEL_OK")
</pallas_src>

<mosaic_0001>
module attributes {stable_mosaic.version = 11 : i64} {
  func.func @_scale_mul_kernel(%arg0: memref<1024x1xf32, #tpu.memory_space<vmem>>, %arg1: memref<1024x49xf32, #tpu.memory_space<vmem>>, %arg2: memref<1024x49xf32, #tpu.memory_space<vmem>>) attributes {dimension_semantics = [], scalar_prefetch = 0 : i64, scratch_operands = 0 : i64, tpu.core_type = #tpu.core_type<tc>} {
    %c0 = arith.constant 0 : index
    %c0_0 = arith.constant 0 : index
    %0 = vector.load %arg0[%c0, %c0_0] : memref<1024x1xf32, #tpu.memory_space<vmem>>, vector<1024x1xf32>
    %c0_1 = arith.constant 0 : index
    %c0_2 = arith.constant 0 : index
    %1 = vector.load %arg1[%c0_1, %c0_2] : memref<1024x49xf32, #tpu.memory_space<vmem>>, vector<1024x49xf32>
    %2 = vector.broadcast %0 : vector<1024x1xf32> to vector<1024x49xf32>
    %3 = arith.mulf %2, %1 : vector<1024x49xf32>
    %c0_3 = arith.constant 0 : index
    %c0_4 = arith.constant 0 : index
    %4 = vector.load %arg2[%c0_3, %c0_4] : memref<1024x49xf32, #tpu.memory_space<vmem>>, vector<1024x49xf32>
    tpu.vector_store %arg2[%c0_3, %c0_4], %3 {strides = array<i32>} : memref<1024x49xf32, #tpu.memory_space<vmem>>, vector<1024x49xf32>,
    return
  }
}

</mosaic_0001>

<bundles_post_ra>
// kernel: tpu_custom_call.1
= control target key start
LH: loop header
LB: loop body
LE: loop exit
PB: predicated region body
PF: predicated region fallthrough
CT: control target
= control target key end

     0   :  { %v1171_v0 = vmov 0   ;;  %vm1035_vm0 = vcmask 400384   ;;  %s2467_s0 = inlined_call_operand.vmem [shape: f32[1024,1], index: 0, kind: input, shape index: {}]   ;;  %s2468_s1 = inlined_call_operand.vmem [shape: f32[1024,49], index: 1, kind: input, shape index: {}]   ;;  %s2469_s2 = inlined_call_operand.vmem [shape: f32[1024,49], index: 2, kind: output, shape index: {}]  }
   0x1   :  { %1170 = vset.pattern.permute.xlu1 %v1171_v0  ;;  %1169 = vset.pattern.permute.xlu0 %v1171_v0  ;;  %v13_v1 = vld [vmem:[%s2467_s0 + $0x10] sm:$0xff]  ;;  %v11_v2 = vld [vmem:[%s2467_s0] sm:$0xff]  ;;  %v14_v3 = vld [vmem:[%s2467_s0 + $0x18] sm:$0xff] }
   0x2   :  { %279 = vperm.xlu1 %1170, %v13_v1   ;;  %269 = vperm.xlu0 %1169, %v11_v2   ;;  %v12_v4 = vld [vmem:[%s2467_s0 + $0x8] sm:$0xff]  ;;  %v15_v6 = vld [vmem:[%s2467_s0 + $0x20] sm:$0xff]  ;;  %v18_v7 = vld [vmem:[%s2467_s0 + $0x38] sm:$0xff] }
   0x3   :  { %v16_v5 = vld [vmem:[%s2467_s0 + $0x28] sm:$0xff]  ;;  %v17_v8 = vld [vmem:[%s2467_s0 + $0x30] sm:$0xff]  ;;  %v19_v10 = vld [vmem:[%s2467_s0 + $0x40] sm:$0xff] }
   0x4   :  { %v20_v9 = vld [vmem:[%s2467_s0 + $0x48] sm:$0xff]  ;;  %v22_v11 = vld [vmem:[%s2467_s0 + $0x58] sm:$0xff]  ;;  %v21_v12 = vld [vmem:[%s2467_s0 + $0x50] sm:$0xff] }
   0x5   :  { %v24_v13 = vld [vmem:[%s2467_s0 + $0x68] sm:$0xff]  ;;  %v23_v14 = vld [vmem:[%s2467_s0 + $0x60] sm:$0xff]  ;;  %v26_v15 = vld [vmem:[%s2467_s0 + $0x78] sm:$0xff] }
   0x6   :  { %284 = vperm.xlu1 %1170, %v14_v3   ;;  %274 = vperm.xlu0 %1169, %v12_v4   ;;  %v25_v16 = vld [vmem:[%s2467_s0 + $0x70] sm:$0xff]  ;;  %v28_v17 = vld [vmem:[%s2467_s0 + $0x88] sm:$0xff]  ;;  %v27_v18 = vld [vmem:[%s2467_s0 + $0x80] sm:$0xff] }
   0x7   :  { %v30_v19 = vld [vmem:[%s2467_s0 + $0x98] sm:$0xff]  ;;  %v29_v20 = vld [vmem:[%s2467_s0 + $0x90] sm:$0xff]  ;;  %v32_v21 = vld [vmem:[%s2467_s0 + $0xa8] sm:$0xff] }
   0x8   :  { %v31_v22 = vld [vmem:[%s2467_s0 + $0xa0] sm:$0xff]  ;;  %v34_v23 = vld [vmem:[%s2467_s0 + $0xb8] sm:$0xff]  ;;  %v33_v24 = vld [vmem:[%s2467_s0 + $0xb0] sm:$0xff] }
   0x9   :  { %v36_v25 = vld [vmem:[%s2467_s0 + $0xc8] sm:$0xff]  ;;  %v35_v26 = vld [vmem:[%s2467_s0 + $0xc0] sm:$0xff]  ;;  %v38_v27 = vld [vmem:[%s2467_s0 + $0xd8] sm:$0xff] }
   0xa   :  { %294 = vperm.xlu1 %1170, %v16_v5   ;;  %289 = vperm.xlu0 %1169, %v15_v6   ;;  %v37_v28 = vld [vmem:[%s2467_s0 + $0xd0] sm:$0xff]  ;;  %v40_v29 = vld [vmem:[%s2467_s0 + $0xe8] sm:$0xff]  ;;  %v39_v30 = vld [vmem:[%s2467_s0 + $0xe0] sm:$0xff] }
   0xb   :  { %v42_v31 = vld [vmem:[%s2467_s0 + $0xf8] sm:$0xff]  ;;  %v41_v32 = vld [vmem:[%s2467_s0 + $0xf0] sm:$0xff]  ;;  %v44_v33 = vld [vmem:[%s2467_s0 + $0x108] sm:$0xff] }
   0xc   :  { %v43_v34 = vld [vmem:[%s2467_s0 + $0x100] sm:$0xff]  ;;  %v46_v35 = vld [vmem:[%s2467_s0 + $0x118] sm:$0xff]  ;;  %v45_v36 = vld [vmem:[%s2467_s0 + $0x110] sm:$0xff] }
   0xd   :  { %v48_v37 = vld [vmem:[%s2467_s0 + $0x128] sm:$0xff]  ;;  %v47_v38 = vld [vmem:[%s2467_s0 + $0x120] sm:$0xff]  ;;  %v50_v39 = vld [vmem:[%s2467_s0 + $0x138] sm:$0xff] }
   0xe   :  { %304 = vperm.xlu1 %1170, %v18_v7   ;;  %299 = vperm.xlu0 %1169, %v17_v8   ;;  %v49_v40 = vld [vmem:[%s2467_s0 + $0x130] sm:$0xff]  ;;  %v52_v41 = vld [vmem:[%s2467_s0 + $0x148] sm:$0xff]  ;;  %v51_v42 = vld [vmem:[%s2467_s0 + $0x140] sm:$0xff] }
   0xf   :  { %v54_v43 = vld [vmem:[%s2467_s0 + $0x158] sm:$0xff]  ;;  %v53_v44 = vld [vmem:[%s2467_s0 + $0x150] sm:$0xff]  ;;  %v56_v45 = vld [vmem:[%s2467_s0 + $0x168] sm:$0xff] }
  0x10   :  { %v55_v46 = vld [vmem:[%s2467_s0 + $0x160] sm:$0xff]  ;;  %v58_v47 = vld [vmem:[%s2467_s0 + $0x178] sm:$0xff]  ;;  %v57_v48 = vld [vmem:[%s2467_s0 + $0x170] sm:$0xff] }
  0x11   :  { %v60_v49 = vld [vmem:[%s2467_s0 + $0x188] sm:$0xff]  ;;  %v59_v50 = vld [vmem:[%s2467_s0 + $0x180] sm:$0xff]  ;;  %v62_v51 = vld [vmem:[%s2467_s0 + $0x198] sm:$0xff] }
  0x12   :  { %314 = vperm.xlu1 %1170, %v20_v9   ;;  %309 = vperm.xlu0 %1169, %v19_v10   ;;  %v61_v52 = vld [vmem:[%s2467_s0 + $0x190] sm:$0xff]  ;;  %v64_v53 = vld [vmem:[%s2467_s0 + $0x1a8] sm:$0xff]  ;;  %v63_v54 = vld [vmem:[%s2467_s0 + $0x1a0] sm:$0xff] }
  0x13   :  { %v66_v55 = vld [vmem:[%s2467_s0 + $0x1b8] sm:$0xff]  ;;  %v65_v56 = vld [vmem:[%s2467_s0 + $0x1b0] sm:$0xff]  ;;  %v68_v57 = vld [vmem:[%s2467_s0 + $0x1c8] sm:$0xff] }
  0x14   :  { %v67_v58 = vld [vmem:[%s2467_s0 + $0x1c0] sm:$0xff]  ;;  %v70_v59 = vld [vmem:[%s2467_s0 + $0x1d8] sm:$0xff]  ;;  %v69_v60 = vld [vmem:[%s2467_s0 + $0x1d0] sm:$0xff] }
  0x15   :  { %v72_v61 = vld [vmem:[%s2467_s0 + $0x1e8] sm:$0xff]  ;;  %v71_v62 = vld [vmem:[%s2467_s0 + $0x1e0] sm:$0xff]  ;;  %v141_v63 = vld [vmem:[%s2468_s1 + $0x10] sm:$0xff] }
  0x16   :  { %324 = vperm.xlu1 %1170, %v22_v11   ;;  %319 = vperm.xlu0 %1169, %v21_v12   ;;  %v139_v0 = vld [vmem:[%s2468_s1] sm:$0xff]  ;;  %v74_v1 = vld [vmem:[%s2467_s0 + $0x1f8] sm:$0xff]  ;;  %v73_v2 = vld [vmem:[%s2467_s0 + $0x1f0] sm:$0xff] }
  0x17   :  { %v142_v7 = vld [vmem:[%s2468_s1 + $0x18] sm:$0xff]  ;;  %v140_v8 = vld [vmem:[%s2468_s1 + $0x8] sm:$0xff]  ;;  %v75_v10 = vld [vmem:[%s2467_s0 + $0x200] sm:$0xff] }
  0x18   :  { %v76_v9 = vld [vmem:[%s2467_s0 + $0x208] sm:$0xff] }
  0x1a   :  { %334 = vperm.xlu1 %1170, %v24_v13   ;;  %329 = vperm.xlu0 %1169, %v23_v14  }
  0x1e   :  { %344 = vperm.xlu1 %1170, %v26_v15   ;;  %339 = vperm.xlu0 %1169, %v25_v16   ;;  %v144_v15 = vld [vmem:[%s2468_s1 + $0x28] sm:$0xff]  ;;  %v143_v16 = vld [vmem:[%s2468_s1 + $0x20] sm:$0xff] }
  0x22   :  { %354 = vperm.xlu1 %1170, %v28_v17   ;;  %349 = vperm.xlu0 %1169, %v27_v18   ;;  %v78_v17 = vld [vmem:[%s2467_s0 + $0x218] sm:$0xff]  ;;  %v77_v18 = vld [vmem:[%s2467_s0 + $0x210] sm:$0xff] }
  0x26   :  { %364 = vperm.xlu1 %1170, %v30_v19   ;;  %359 = vperm.xlu0 %1169, %v29_v20  }
  0x2a   :  { %374 = vperm.xlu1 %1170, %v32_v21   ;;  %369 = vperm.xlu0 %1169, %v31_v22  }
  0x2e   :  { %384 = vperm.xlu1 %1170, %v34_v23   ;;  %379 = vperm.xlu0 %1169, %v33_v24   ;;  %v146_v23 = vld [vmem:[%s2468_s1 + $0x38] sm:$0xff]  ;;  %v145_v24 = vld [vmem:[%s2468_s1 + $0x30] sm:$0xff] }
  0x32   :  { %394 = vperm.xlu1 %1170, %v36_v25   ;;  %389 = vperm.xlu0 %1169, %v35_v26   ;;  %v80_v25 = vld [vmem:[%s2467_s0 + $0x228] sm:$0xff]  ;;  %v79_v26 = vld [vmem:[%s2467_s0 + $0x220] sm:$0xff] }
  0x36   :  { %404 = vperm.xlu1 %1170, %v38_v27   ;;  %399 = vperm.xlu0 %1169, %v37_v28  }
  0x3a   :  { %414 = vperm.xlu1 %1170, %v40_v29   ;;  %409 = vperm.xlu0 %1169, %v39_v30  }
  0x3e   :  { %424 = vperm.xlu1 %1170, %v42_v31   ;;  %419 = vperm.xlu0 %1169, %v41_v32   ;;  %v148_v31 = vld [vmem:[%s2468_s1 + $0x48] sm:$0xff]  ;;  %v147_v32 = vld [vmem:[%s2468_s1 + $0x40] sm:$0xff] }
  0x42   :  { %434 = vperm.xlu1 %1170, %v44_v33   ;;  %429 = vperm.xlu0 %1169, %v43_v34   ;;  %v82_v33 = vld [vmem:[%s2467_s0 + $0x238] sm:$0xff]  ;;  %v81_v34 = vld [vmem:[%s2467_s0 + $0x230] sm:$0xff] }
  0x46   :  { %444 = vperm.xlu1 %1170, %v46_v35   ;;  %439 = vperm.xlu0 %1169, %v45_v36  }
  0x4a   :  { %454 = vperm.xlu1 %1170, %v48_v37   ;;  %449 = vperm.xlu0 %1169, %v47_v38  }
  0x4e   :  { %464 = vperm.xlu1 %1170, %v50_v39   ;;  %459 = vperm.xlu0 %1169, %v49_v40   ;;  %v150_v39 = vld [vmem:[%s2468_s1 + $0x58] sm:$0xff]  ;;  %v149_v40 = vld [vmem:[%s2468_s1 + $0x50] sm:$0xff] }
  0x52   :  { %474 = vperm.xlu1 %1170, %v52_v41   ;;  %469 = vperm.xlu0 %1169, %v51_v42   ;;  %v84_v41 = vld [vmem:[%s2467_s0 + $0x248] sm:$0xff]  ;;  %v83_v42 = vld [vmem:[%s2467_s0 + $0x240] sm:$0xff] }
  0x56   :  { %484 = vperm.xlu1 %1170, %v54_v43   ;;  %479 = vperm.xlu0 %1169, %v53_v44  }
  0x5a   :  { %494 = vperm.xlu1 %1170, %v56_v45   ;;  %489 = vperm.xlu0 %1169, %v55_v46  }
  0x5e   :  { %504 = vperm.xlu1 %1170, %v58_v47   ;;  %499 = vperm.xlu0 %1169, %v57_v48   ;;  %v152_v47 = vld [vmem:[%s2468_s1 + $0x68] sm:$0xff]  ;;  %v151_v48 = vld [vmem:[%s2468_s1 + $0x60] sm:$0xff] }
  0x62   :  { %514 = vperm.xlu1 %1170, %v60_v49   ;;  %509 = vperm.xlu0 %1169, %v59_v50   ;;  %v86_v49 = vld [vmem:[%s2467_s0 + $0x258] sm:$0xff]  ;;  %v85_v50 = vld [vmem:[%s2467_s0 + $0x250] sm:$0xff] }
  0x66   :  { %524 = vperm.xlu1 %1170, %v62_v51   ;;  %519 = vperm.xlu0 %1169, %v61_v52  }
  0x6a   :  { %534 = vperm.xlu1 %1170, %v64_v53   ;;  %529 = vperm.xlu0 %1169, %v63_v54  }
  0x6e   :  { %544 = vperm.xlu1 %1170, %v66_v55   ;;  %539 = vperm.xlu0 %1169, %v65_v56   ;;  %v154_v55 = vld [vmem:[%s2468_s1 + $0x78] sm:$0xff]  ;;  %v153_v56 = vld [vmem:[%s2468_s1 + $0x70] sm:$0xff] }
  0x72   :  { %554 = vperm.xlu1 %1170, %v68_v57   ;;  %549 = vperm.xlu0 %1169, %v67_v58   ;;  %v88_v57 = vld [vmem:[%s2467_s0 + $0x268] sm:$0xff]  ;;  %v87_v58 = vld [vmem:[%s2467_s0 + $0x260] sm:$0xff] }
  0x76   :  { %564 = vperm.xlu1 %1170, %v70_v59   ;;  %559 = vperm.xlu0 %1169, %v69_v60  }
  0x7a   :  { %574 = vperm.xlu1 %1170, %v72_v61   ;;  %569 = vperm.xlu0 %1169, %v71_v62  }
  0x7d   :  { %v280_v3 = vpop.permute.xlu1 %279  ;;  %v270_v4 = vpop.permute.xlu0 %269 }
  0x7e   :  { %v909_v5 = vmul.f32 %v280_v3, %v141_v63  ;;  %v907_v6 = vmul.f32 %v270_v4, %v139_v0  ;;  %584 = vperm.xlu1 %1170, %v74_v1   ;;  %579 = vperm.xlu0 %1169, %v73_v2   ;;  %v156_v63 = vld [vmem:[%s2468_s1 + $0x88] sm:$0xff]  ;;  %v155_v0 = vld [vmem:[%s2468_s1 + $0x80] sm:$0xff]  ;;  %v90_v1 = vld [vmem:[%s2467_s0 + $0x278] sm:$0xff] }
  0x7f   :  { %v89_v2 = vld [vmem:[%s2467_s0 + $0x270] sm:$0xff] }
  0x80   :  { %1038 = vst.msk [vmem:[%s2469_s2 + $0x10] sm:$0xff] %vm1035_vm0, %v909_v5  ;;  %1036 = vst.msk [vmem:[%s2469_s2] sm:$0xff] %vm1035_vm0, %v907_v6 }
  0x81   :  { %v285_v11 = vpop.permute.xlu1 %284  ;;  %v275_v12 = vpop.permute.xlu0 %274 }
  0x82   :  { %v910_v13 = vmul.f32 %v285_v11, %v142_v7  ;;  %v908_v14 = vmul.f32 %v275_v12, %v140_v8  ;;  %594 = vperm.xlu1 %1170, %v76_v9   ;;  %589 = vperm.xlu0 %1169, %v75_v10   ;;  %v158_v7 = vld [vmem:[%s2468_s1 + $0x98] sm:$0xff]  ;;  %v157_v8 = vld [vmem:[%s2468_s1 + $0x90] sm:$0xff]  ;;  %v92_v9 = vld [vmem:[%s2467_s0 + $0x288] sm:$0xff] }
  0x83   :  { %v91_v10 = vld [vmem:[%s2467_s0 + $0x280] sm:$0xff] }
  0x84   :  { %1039 = vst.msk [vmem:[%s2469_s2 + $0x18] sm:$0xff] %vm1035_vm0, %v910_v13  ;;  %1037 = vst.msk [vmem:[%s2469_s2 + $0x8] sm:$0xff] %vm1035_vm0, %v908_v14 }
  0x85   :  { %v295_v19 = vpop.permute.xlu1 %294  ;;  %v290_v20 = vpop.permute.xlu0 %289 }
  0x86   :  { %v912_v21 = vmul.f32 %v295_v19, %v144_v15  ;;  %v911_v22 = vmul.f32 %v290_v20, %v143_v16  ;;  %604 = vperm.xlu1 %1170, %v78_v17   ;;  %599 = vperm.xlu0 %1169, %v77_v18   ;;  %v160_v15 = vld [vmem:[%s2468_s1 + $0xa8] sm:$0xff]  ;;  %v159_v16 = vld [vmem:[%s2468_s1 + $0xa0] sm:$0xff]  ;;  %v94_v17 = vld [vmem:[%s2467_s0 + $0x298] sm:$0xff] }
  0x87   :  { %v93_v18 = vld [vmem:[%s2467_s0 + $0x290] sm:$0xff] }
  0x88   :  { %1041 = vst.msk [vmem:[%s2469_s2 + $0x28] sm:$0xff] %vm1035_vm0, %v912_v21  ;;  %1040 = vst.msk [vmem:[%s2469_s2 + $0x20] sm:$0xff] %vm1035_vm0, %v911_v22 }
  0x89   :  { %v305_v27 = vpop.permute.xlu1 %304  ;;  %v300_v28 = vpop.permute.xlu0 %299 }
  0x8a   :  { %v914_v29 = vmul.f32 %v305_v27, %v146_v23  ;;  %v913_v30 = vmul.f32 %v300_v28, %v145_v24  ;;  %614 = vperm.xlu1 %1170, %v80_v25   ;;  %609 = vperm.xlu0 %1169, %v79_v26   ;;  %v162_v23 = vld [vmem:[%s2468_s1 + $0xb8] sm:$0xff]  ;;  %v161_v24 = vld [vmem:[%s2468_s1 + $0xb0] sm:$0xff]  ;;  %v96_v25 = vld [vmem:[%s2467_s0 + $0x2a8] sm:$0xff] }
  0x8b   :  { %v95_v26 = vld [vmem:[%s2467_s0 + $0x2a0] sm:$0xff] }
  0x8c   :  { %1043 = vst.msk [vmem:[%s2469_s2 + $0x38] sm:$0xff] %vm1035_vm0, %v914_v29  ;;  %1042 = vst.msk [vmem:[%s2469_s2 + $0x30] sm:$0xff] %vm1035_vm0, %v913_v30 }
  0x8d   :  { %v315_v35 = vpop.permute.xlu1 %314  ;;  %v310_v36 = vpop.permute.xlu0 %309 }
  0x8e   :  { %v916_v37 = vmul.f32 %v315_v35, %v148_v31  ;;  %v915_v38 = vmul.f32 %v310_v36, %v147_v32  ;;  %624 = vperm.xlu1 %1170, %v82_v33   ;;  %619 = vperm.xlu0 %1169, %v81_v34   ;;  %v164_v31 = vld [vmem:[%s2468_s1 + $0xc8] sm:$0xff]  ;;  %v163_v32 = vld [vmem:[%s2468_s1 + $0xc0] sm:$0xff]  ;;  %v98_v33 = vld [vmem:[%s2467_s0 + $0x2b8] sm:$0xff] }
  0x8f   :  { %v97_v34 = vld [vmem:[%s2467_s0 + $0x2b0] sm:$0xff] }
  0x90   :  { %1045 = vst.msk [vmem:[%s2469_s2 + $0x48] sm:$0xff] %vm1035_vm0, %v916_v37  ;;  %1044 = vst.msk [vmem:[%s2469_s2 + $0x40] sm:$0xff] %vm1035_vm0, %v915_v38 }
  0x91   :  { %v325_v43 = vpop.permute.xlu1 %324  ;;  %v320_v44 = vpop.permute.xlu0 %319 }
  0x92   :  { %v918_v45 = vmul.f32 %v325_v43, %v150_v39  ;;  %v917_v46 = vmul.f32 %v320_v44, %v149_v40  ;;  %634 = vperm.xlu1 %1170, %v84_v41   ;;  %629 = vperm.xlu0 %1169, %v83_v42   ;;  %v166_v39 = vld [vmem:[%s2468_s1 + $0xd8] sm:$0xff]  ;;  %v165_v40 = vld [vmem:[%s2468_s1 + $0xd0] sm:$0xff]  ;;  %v100_v41 = vld [vmem:[%s2467_s0 + $0x2c8] sm:$0xff] }
  0x93   :  { %v99_v42 = vld [vmem:[%s2467_s0 + $0x2c0] sm:$0xff] }
  0x94   :  { %1047 = vst.msk [vmem:[%s2469_s2 + $0x58] sm:$0xff] %vm1035_vm0, %v918_v45  ;;  %1046 = vst.msk [vmem:[%s2469_s2 + $0x50] sm:$0xff] %vm1035_vm0, %v917_v46 }
  0x95   :  { %v335_v51 = vpop.permute.xlu1 %334  ;;  %v330_v52 = vpop.permute.xlu0 %329 }
  0x96   :  { %v920_v53 = vmul.f32 %v335_v51, %v152_v47  ;;  %v919_v54 = vmul.f32 %v330_v52, %v151_v48  ;;  %644 = vperm.xlu1 %1170, %v86_v49   ;;  %639 = vperm.xlu0 %1169, %v85_v50   ;;  %v168_v47 = vld [vmem:[%s2468_s1 + $0xe8] sm:$0xff]  ;;  %v167_v48 = vld [vmem:[%s2468_s1 + $0xe0] sm:$0xff]  ;;  %v102_v49 = vld [vmem:[%s2467_s0 + $0x2d8] sm:$0xff] }
  0x97   :  { %v101_v50 = vld [vmem:[%s2467_s0 + $0x2d0] sm:$0xff] }
  0x98   :  { %1049 = vst.msk [vmem:[%s2469_s2 + $0x68] sm:$0xff] %vm1035_vm0, %v920_v53  ;;  %1048 = vst.msk [vmem:[%s2469_s2 + $0x60] sm:$0xff] %vm1035_vm0, %v919_v54 }
  0x99   :  { %v345_v59 = vpop.permute.xlu1 %344  ;;  %v340_v60 = vpop.permute.xlu0 %339 }
  0x9a   :  { %v922_v61 = vmul.f32 %v345_v59, %v154_v55  ;;  %v921_v62 = vmul.f32 %v340_v60, %v153_v56  ;;  %654 = vperm.xlu1 %1170, %v88_v57   ;;  %649 = vperm.xlu0 %1169, %v87_v58   ;;  %v170_v55 = vld [vmem:[%s2468_s1 + $0xf8] sm:$0xff]  ;;  %v169_v56 = vld [vmem:[%s2468_s1 + $0xf0] sm:$0xff]  ;;  %v104_v57 = vld [vmem:[%s2467_s0 + $0x2e8] sm:$0xff] }
  0x9b   :  { %v103_v58 = vld [vmem:[%s2467_s0 + $0x2e0] sm:$0xff] }
  0x9c   :  { %1051 = vst.msk [vmem:[%s2469_s2 + $0x78] sm:$0xff] %vm1035_vm0, %v922_v61  ;;  %1050 = vst.msk [vmem:[%s2469_s2 + $0x70] sm:$0xff] %vm1035_vm0, %v921_v62 }
  0x9d   :  { %v355_v3 = vpop.permute.xlu1 %354  ;;  %v350_v4 = vpop.permute.xlu0 %349 }
  0x9e   :  { %v924_v5 = vmul.f32 %v355_v3, %v156_v63  ;;  %v923_v6 = vmul.f32 %v350_v4, %v155_v0  ;;  %664 = vperm.xlu1 %1170, %v90_v1   ;;  %659 = vperm.xlu0 %1169, %v89_v2   ;;  %v172_v63 = vld [vmem:[%s2468_s1 + $0x108] sm:$0xff]  ;;  %v171_v0 = vld [vmem:[%s2468_s1 + $0x100] sm:$0xff]  ;;  %v106_v1 = vld [vmem:[%s2467_s0 + $0x2f8] sm:$0xff] }
  0x9f   :  { %v105_v2 = vld [vmem:[%s2467_s0 + $0x2f0] sm:$0xff] }
  0xa0   :  { %1053 = vst.msk [vmem:[%s2469_s2 + $0x88] sm:$0xff] %vm1035_vm0, %v924_v5  ;;  %1052 = vst.msk [vmem:[%s2469_s2 + $0x80] sm:$0xff] %vm1035_vm0, %v923_v6 }
  0xa1   :  { %v365_v11 = vpop.permute.xlu1 %364  ;;  %v360_v12 = vpop.permute.xlu0 %359 }
  0xa2   :  { %v926_v13 = vmul.f32 %v365_v11, %v158_v7  ;;  %v925_v14 = vmul.f32 %v360_v12, %v157_v8  ;;  %674 = vperm.xlu1 %1170, %v92_v9   ;;  %669 = vperm.xlu0 %1169, %v91_v10   ;;  %v174_v7 = vld [vmem:[%s2468_s1 + $0x118] sm:$0xff]  ;;  %v173_v8 = vld [vmem:[%s2468_s1 + $0x110] sm:$0xff]  ;;  %v108_v9 = vld [vmem:[%s2467_s0 + $0x308] sm:$0xff] }
  0xa3   :  { %v107_v10 = vld [vmem:[%s2467_s0 + $0x300] sm:$0xff] }
  0xa4   :  { %1055 = vst.msk [vmem:[%s2469_s2 + $0x98] sm:$0xff] %vm1035_vm0, %v926_v13  ;;  %1054 = vst.msk [vmem:[%s2469_s2 + $0x90] sm:$0xff] %vm1035_vm0, %v925_v14 }
  0xa5   :  { %v375_v19 = vpop.permute.xlu1 %374  ;;  %v370_v20 = vpop.permute.xlu0 %369 }
  0xa6   :  { %v928_v21 = vmul.f32 %v375_v19, %v160_v15  ;;  %v927_v22 = vmul.f32 %v370_v20, %v159_v16  ;;  %684 = vperm.xlu1 %1170, %v94_v17   ;;  %679 = vperm.xlu0 %1169, %v93_v18   ;;  %v176_v15 = vld [vmem:[%s2468_s1 + $0x128] sm:$0xff]  ;;  %v175_v16 = vld [vmem:[%s2468_s1 + $0x120] sm:$0xff]  ;;  %v110_v17 = vld [vmem:[%s2467_s0 + $0x318] sm:$0xff] }
  0xa7   :  { %v109_v18 = vld [vmem:[%s2467_s0 + $0x310] sm:$0xff] }
  0xa8   :  { %1057 = vst.msk [vmem:[%s2469_s2 + $0xa8] sm:$0xff] %vm1035_vm0, %v928_v21  ;;  %1056 = vst.msk [vmem:[%s2469_s2 + $0xa0] sm:$0xff] %vm1035_vm0, %v927_v22 }
  0xa9   :  { %v385_v27 = vpop.permute.xlu1 %384  ;;  %v380_v28 = vpop.permute.xlu0 %379 }
  0xaa   :  { %v930_v29 = vmul.f32 %v385_v27, %v162_v23  ;;  %v929_v30 = vmul.f32 %v380_v28, %v161_v24  ;;  %694 = vperm.xlu1 %1170, %v96_v25   ;;  %689 = vperm.xlu0 %1169, %v95_v26   ;;  %v178_v23 = vld [vmem:[%s2468_s1 + $0x138] sm:$0xff]  ;;  %v177_v24 = vld [vmem:[%s2468_s1 + $0x130] sm:$0xff]  ;;  %v112_v25 = vld [vmem:[%s2467_s0 + $0x328] sm:$0xff] }
  0xab   :  { %v111_v26 = vld [vmem:[%s2467_s0 + $0x320] sm:$0xff] }
  0xac   :  { %1059 = vst.msk [vmem:[%s2469_s2 + $0xb8] sm:$0xff] %vm1035_vm0, %v930_v29  ;;  %1058 = vst.msk [vmem:[%s2469_s2 + $0xb0] sm:$0xff] %vm1035_vm0, %v929_v30 }
  0xad   :  { %v395_v35 = vpop.permute.xlu1 %394  ;;  %v390_v36 = vpop.permute.xlu0 %389 }
  0xae   :  { %v932_v37 = vmul.f32 %v395_v35, %v164_v31  ;;  %v931_v38 = vmul.f32 %v390_v36, %v163_v32  ;;  %704 = vperm.xlu1 %1170, %v98_v33   ;;  %699 = vperm.xlu0 %1169, %v97_v34   ;;  %v180_v31 = vld [vmem:[%s2468_s1 + $0x148] sm:$0xff]  ;;  %v179_v32 = vld [vmem:[%s2468_s1 + $0x140] sm:$0xff]  ;;  %v114_v33 = vld [vmem:[%s2467_s0 + $0x338] sm:$0xff] }
  0xaf   :  { %v113_v34 = vld [vmem:[%s2467_s0 + $0x330] sm:$0xff] }
  0xb0   :  { %1061 = vst.msk [vmem:[%s2469_s2 + $0xc8] sm:$0xff] %vm1035_vm0, %v932_v37  ;;  %1060 = vst.msk [vmem:[%s2469_s2 + $0xc0] sm:$0xff] %vm1035_vm0, %v931_v38 }
  0xb1   :  { %v405_v43 = vpop.permute.xlu1 %404  ;;  %v400_v44 = vpop.permute.xlu0 %399 }
  0xb2   :  { %v934_v45 = vmul.f32 %v405_v43, %v166_v39  ;;  %v933_v46 = vmul.f32 %v400_v44, %v165_v40  ;;  %714 = vperm.xlu1 %1170, %v100_v41   ;;  %709 = vperm.xlu0 %1169, %v99_v42   ;;  %v182_v39 = vld [vmem:[%s2468_s1 + $0x158] sm:$0xff]  ;;  %v181_v40 = vld [vmem:[%s2468_s1 + $0x150] sm:$0xff]  ;;  %v116_v41 = vld [vmem:[%s2467_s0 + $0x348] sm:$0xff] }
  0xb3   :  { %v115_v42 = vld [vmem:[%s2467_s0 + $0x340] sm:$0xff] }
  0xb4   :  { %1063 = vst.msk [vmem:[%s2469_s2 + $0xd8] sm:$0xff] %vm1035_vm0, %v934_v45  ;;  %1062 = vst.msk [vmem:[%s2469_s2 + $0xd0] sm:$0xff] %vm1035_vm0, %v933_v46 }
  0xb5   :  { %v415_v51 = vpop.permute.xlu1 %414  ;;  %v410_v52 = vpop.permute.xlu0 %409 }
  0xb6   :  { %v936_v53 = vmul.f32 %v415_v51, %v168_v47  ;;  %v935_v54 = vmul.f32 %v410_v52, %v167_v48  ;;  %724 = vperm.xlu1 %1170, %v102_v49   ;;  %719 = vperm.xlu0 %1169, %v101_v50   ;;  %v184_v47 = vld [vmem:[%s2468_s1 + $0x168] sm:$0xff]  ;;  %v183_v48 = vld [vmem:[%s2468_s1 + $0x160] sm:$0xff]  ;;  %v118_v49 = vld [vmem:[%s2467_s0 + $0x358] sm:$0xff] }
  0xb7   :  { %v117_v50 = vld [vmem:[%s2467_s0 + $0x350] sm:$0xff] }
  0xb8   :  { %1065 = vst.msk [vmem:[%s2469_s2 + $0xe8] sm:$0xff] %vm1035_vm0, %v936_v53  ;;  %1064 = vst.msk [vmem:[%s2469_s2 + $0xe0] sm:$0xff] %vm1035_vm0, %v935_v54 }
  0xb9   :  { %v425_v59 = vpop.permute.xlu1 %424  ;;  %v420_v60 = vpop.permute.xlu0 %419 }
  0xba   :  { %v938_v61 = vmul.f32 %v425_v59, %v170_v55  ;;  %v937_v62 = vmul.f32 %v420_v60, %v169_v56  ;;  %734 = vperm.xlu1 %1170, %v104_v57   ;;  %729 = vperm.xlu0 %1169, %v103_v58   ;;  %v186_v55 = vld [vmem:[%s2468_s1 + $0x178] sm:$0xff]  ;;  %v185_v56 = vld [vmem:[%s2468_s1 + $0x170] sm:$0xff]  ;;  %v120_v57 = vld [vmem:[%s2467_s0 + $0x368] sm:$0xff] }
  0xbb   :  { %v119_v58 = vld [vmem:[%s2467_s0 + $0x360] sm:$0xff] }
  0xbc   :  { %1067 = vst.msk [vmem:[%s2469_s2 + $0xf8] sm:$0xff] %vm1035_vm0, %v938_v61  ;;  %1066 = vst.msk [vmem:[%s2469_s2 + $0xf0] sm:$0xff] %vm1035_vm0, %v937_v62 }
  0xbd   :  { %v435_v3 = vpop.permute.xlu1 %434  ;;  %v430_v4 = vpop.permute.xlu0 %429 }
  0xbe   :  { %v940_v5 = vmul.f32 %v435_v3, %v172_v63  ;;  %v939_v6 = vmul.f32 %v430_v4, %v171_v0  ;;  %744 = vperm.xlu1 %1170, %v106_v1   ;;  %739 = vperm.xlu0 %1169, %v105_v2   ;;  %v188_v63 = vld [vmem:[%s2468_s1 + $0x188] sm:$0xff]  ;;  %v187_v0 = vld [vmem:[%s2468_s1 + $0x180] sm:$0xff]  ;;  %v122_v1 = vld [vmem:[%s2467_s0 + $0x378] sm:$0xff] }
  0xbf   :  { %v121_v2 = vld [vmem:[%s2467_s0 + $0x370] sm:$0xff] }
  0xc0   :  { %1069 = vst.msk [vmem:[%s2469_s2 + $0x108] sm:$0xff] %vm1035_vm0, %v940_v5  ;;  %1068 = vst.msk [vmem:[%s2469_s2 + $0x100] sm:$0xff] %vm1035_vm0, %v939_v6 }
  0xc1   :  { %v445_v11 = vpop.permute.xlu1 %444  ;;  %v440_v12 = vpop.permute.xlu0 %439 }
  0xc2   :  { %v942_v13 = vmul.f32 %v445_v11, %v174_v7  ;;  %v941_v14 = vmul.f32 %v440_v12, %v173_v8  ;;  %754 = vperm.xlu1 %1170, %v108_v9   ;;  %749 = vperm.xlu0 %1169, %v107_v10   ;;  %v190_v7 = vld [vmem:[%s2468_s1 + $0x198] sm:$0xff]  ;;  %v189_v8 = vld [vmem:[%s2468_s1 + $0x190] sm:$0xff]  ;;  %v124_v9 = vld [vmem:[%s2467_s0 + $0x388] sm:$0xff] }
  0xc3   :  { %v123_v10 = vld [vmem:[%s2467_s0 + $0x380] sm:$0xff] }
  0xc4   :  { %1071 = vst.msk [vmem:[%s2469_s2 + $0x118] sm:$0xff] %vm1035_vm0, %v942_v13  ;;  %1070 = vst.msk [vmem:[%s2469_s2 + $0x110] sm:$0xff] %vm1035_vm0, %v941_v14 }
  0xc5   :  { %v455_v19 = vpop.permute.xlu1 %454  ;;  %v450_v20 = vpop.permute.xlu0 %449 }
  0xc6   :  { %v944_v21 = vmul.f32 %v455_v19, %v176_v15  ;;  %v943_v22 = vmul.f32 %v450_v20, %v175_v16  ;;  %764 = vperm.xlu1 %1170, %v110_v17   ;;  %759 = vperm.xlu0 %1169, %v109_v18   ;;  %v192_v15 = vld [vmem:[%s2468_s1 + $0x1a8] sm:$0xff]  ;;  %v191_v16 = vld [vmem:[%s2468_s1 + $0x1a0] sm:$0xff]  ;;  %v126_v17 = vld [vmem:[%s2467_s0 + $0x398] sm:$0xff] }
  0xc7   :  { %v125_v18 = vld [vmem:[%s2467_s0 + $0x390] sm:$0xff] }
  0xc8   :  { %1073 = vst.msk [vmem:[%s2469_s2 + $0x128] sm:$0xff] %vm1035_vm0, %v944_v21  ;;  %1072 = vst.msk [vmem:[%s2469_s2 + $0x120] sm:$0xff] %vm1035_vm0, %v943_v22 }
  0xc9   :  { %v465_v27 = vpop.permute.xlu1 %464  ;;  %v460_v28 = vpop.permute.xlu0 %459 }
  0xca   :  { %v946_v29 = vmul.f32 %v465_v27, %v178_v23  ;;  %v945_v30 = vmul.f32 %v460_v28, %v177_v24  ;;  %774 = vperm.xlu1 %1170, %v112_v25   ;;  %769 = vperm.xlu0 %1169, %v111_v26   ;;  %v194_v23 = vld [vmem:[%s2468_s1 + $0x1b8] sm:$0xff]  ;;  %v193_v24 = vld [vmem:[%s2468_s1 + $0x1b0] sm:$0xff]  ;;  %v128_v25 = vld [vmem:[%s2467_s0 + $0x3a8] sm:$0xff] }
  0xcb   :  { %v127_v26 = vld [vmem:[%s2467_s0 + $0x3a0] sm:$0xff] }
  0xcc   :  { %1075 = vst.msk [vmem:[%s2469_s2 + $0x138] sm:$0xff] %vm1035_vm0, %v946_v29  ;;  %1074 = vst.msk [vmem:[%s2469_s2 + $0x130] sm:$0xff] %vm1035_vm0, %v945_v30 }
  0xcd   :  { %v475_v35 = vpop.permute.xlu1 %474  ;;  %v470_v36 = vpop.permute.xlu0 %469 }
  0xce   :  { %v948_v37 = vmul.f32 %v475_v35, %v180_v31  ;;  %v947_v38 = vmul.f32 %v470_v36, %v179_v32  ;;  %784 = vperm.xlu1 %1170, %v114_v33   ;;  %779 = vperm.xlu0 %1169, %v113_v34   ;;  %v196_v31 = vld [vmem:[%s2468_s1 + $0x1c8] sm:$0xff]  ;;  %v195_v32 = vld [vmem:[%s2468_s1 + $0x1c0] sm:$0xff]  ;;  %v130_v33 = vld [vmem:[%s2467_s0 + $0x3b8] sm:$0xff] }
  0xcf   :  { %v129_v34 = vld [vmem:[%s2467_s0 + $0x3b0] sm:$0xff] }
  0xd0   :  { %1077 = vst.msk [vmem:[%s2469_s2 + $0x148] sm:$0xff] %vm1035_vm0, %v948_v37  ;;  %1076 = vst.msk [vmem:[%s2469_s2 + $0x140] sm:$0xff] %vm1035_vm0, %v947_v38 }
  0xd1   :  { %v485_v43 = vpop.permute.xlu1 %484  ;;  %v480_v44 = vpop.permute.xlu0 %479 }
  0xd2   :  { %v950_v45 = vmul.f32 %v485_v43, %v182_v39  ;;  %v949_v46 = vmul.f32 %v480_v44, %v181_v40  ;;  %794 = vperm.xlu1 %1170, %v116_v41   ;;  %789 = vperm.xlu0 %1169, %v115_v42   ;;  %v198_v39 = vld [vmem:[%s2468_s1 + $0x1d8] sm:$0xff]  ;;  %v197_v40 = vld [vmem:[%s2468_s1 + $0x1d0] sm:$0xff]  ;;  %v132_v41 = vld [vmem:[%s2467_s0 + $0x3c8] sm:$0xff] }
  0xd3   :  { %v131_v42 = vld [vmem:[%s2467_s0 + $0x3c0] sm:$0xff] }
  0xd4   :  { %1079 = vst.msk [vmem:[%s2469_s2 + $0x158] sm:$0xff] %vm1035_vm0, %v950_v45  ;;  %1078 = vst.msk [vmem:[%s2469_s2 + $0x150] sm:$0xff] %vm1035_vm0, %v949_v46 }
  0xd5   :  { %v495_v51 = vpop.permute.xlu1 %494  ;;  %v490_v52 = vpop.permute.xlu0 %489 }
  0xd6   :  { %v952_v53 = vmul.f32 %v495_v51, %v184_v47  ;;  %v951_v54 = vmul.f32 %v490_v52, %v183_v48  ;;  %804 = vperm.xlu1 %1170, %v118_v49   ;;  %799 = vperm.xlu0 %1169, %v117_v50   ;;  %v200_v47 = vld [vmem:[%s2468_s1 + $0x1e8] sm:$0xff]  ;;  %v199_v48 = vld [vmem:[%s2468_s1 + $0x1e0] sm:$0xff]  ;;  %v134_v49 = vld [vmem:[%s2467_s0 + $0x3d8] sm:$0xff] }
  0xd7   :  { %v133_v50 = vld [vmem:[%s2467_s0 + $0x3d0] sm:$0xff] }
  0xd8   :  { %1081 = vst.msk [vmem:[%s2469_s2 + $0x168] sm:$0xff] %vm1035_vm0, %v952_v53  ;;  %1080 = vst.msk [vmem:[%s2469_s2 + $0x160] sm:$0xff] %vm1035_vm0, %v951_v54 }
  0xd9   :  { %v505_v59 = vpop.permute.xlu1 %504  ;;  %v500_v60 = vpop.permute.xlu0 %499 }
  0xda   :  { %v954_v61 = vmul.f32 %v505_v59, %v186_v55  ;;  %v953_v62 = vmul.f32 %v500_v60, %v185_v56  ;;  %814 = vperm.xlu1 %1170, %v120_v57   ;;  %809 = vperm.xlu0 %1169, %v119_v58   ;;  %v202_v55 = vld [vmem:[%s2468_s1 + $0x1f8] sm:$0xff]  ;;  %v201_v56 = vld [vmem:[%s2468_s1 + $0x1f0] sm:$0xff]  ;;  %v136_v57 = vld [vmem:[%s2467_s0 + $0x3e8] sm:$0xff] }
  0xdb   :  { %v135_v58 = vld [vmem:[%s2467_s0 + $0x3e0] sm:$0xff] }
  0xdc   :  { %1083 = vst.msk [vmem:[%s2469_s2 + $0x178] sm:$0xff] %vm1035_vm0, %v954_v61  ;;  %1082 = vst.msk [vmem:[%s2469_s2 + $0x170] sm:$0xff] %vm1035_vm0, %v953_v62 }
  0xdd   :  { %v515_v3 = vpop.permute.xlu1 %514  ;;  %v510_v4 = vpop.permute.xlu0 %509 }
  0xde   :  { %v956_v5 = vmul.f32 %v515_v3, %v188_v63  ;;  %v955_v6 = vmul.f32 %v510_v4, %v187_v0  ;;  %824 = vperm.xlu1 %1170, %v122_v1   ;;  %819 = vperm.xlu0 %1169, %v121_v2   ;;  %v204_v63 = vld [vmem:[%s2468_s1 + $0x208] sm:$0xff]  ;;  %v203_v0 = vld [vmem:[%s2468_s1 + $0x200] sm:$0xff]  ;;  %v138_v1 = vld [vmem:[%s2467_s0 + $0x3f8] sm:$0xff] }
  0xdf   :  { %v137_v2 = vld [vmem:[%s2467_s0 + $0x3f0] sm:$0xff] }
  0xe0   :  { %1085 = vst.msk [vmem:[%s2469_s2 + $0x188] sm:$0xff] %vm1035_vm0, %v956_v5  ;;  %1084 = vst.msk [vmem:[%s2469_s2 + $0x180] sm:$0xff] %vm1035_vm0, %v955_v6 }
  0xe1   :  { %v525_v11 = vpop.permute.xlu1 %524  ;;  %v520_v12 = vpop.permute.xlu0 %519 }
  0xe2   :  { %v958_v13 = vmul.f32 %v525_v11, %v190_v7  ;;  %v957_v14 = vmul.f32 %v520_v12, %v189_v8  ;;  %834 = vperm.xlu1 %1170, %v124_v9   ;;  %829 = vperm.xlu0 %1169, %v123_v10   ;;  %v206_v7 = vld [vmem:[%s2468_s1 + $0x218] sm:$0xff]  ;;  %v205_v8 = vld [vmem:[%s2468_s1 + $0x210] sm:$0xff] }
  0xe4   :  { %1087 = vst.msk [vmem:[%s2469_s2 + $0x198] sm:$0xff] %vm1035_vm0, %v958_v13  ;;  %1086 = vst.msk [vmem:[%s2469_s2 + $0x190] sm:$0xff] %vm1035_vm0, %v957_v14  ;;  %v208_v13 = vld [vmem:[%s2468_s1 + $0x228] sm:$0xff]  ;;  %v207_v14 = vld [vmem:[%s2468_s1 + $0x220] sm:$0xff] }
  0xe5   :  { %v535_v19 = vpop.permute.xlu1 %534  ;;  %v530_v20 = vpop.permute.xlu0 %529 }
  0xe6   :  { %v960_v21 = vmul.f32 %v535_v19, %v192_v15  ;;  %v959_v22 = vmul.f32 %v530_v20, %v191_v16  ;;  %844 = vperm.xlu1 %1170, %v126_v17   ;;  %839 = vperm.xlu0 %1169, %v125_v18   ;;  %v210_v19 = vld [vmem:[%s2468_s1 + $0x238] sm:$0xff]  ;;  %v209_v20 = vld [vmem:[%s2468_s1 + $0x230] sm:$0xff] }
  0xe8   :  { %1089 = vst.msk [vmem:[%s2469_s2 + $0x1a8] sm:$0xff] %vm1035_vm0, %v960_v21  ;;  %1088 = vst.msk [vmem:[%s2469_s2 + $0x1a0] sm:$0xff] %vm1035_vm0, %v959_v22 }
  0xe9   :  { %v545_v27 = vpop.permute.xlu1 %544  ;;  %v540_v28 = vpop.permute.xlu0 %539 }
  0xea   :  { %v962_v29 = vmul.f32 %v545_v27, %v194_v23  ;;  %v961_v30 = vmul.f32 %v540_v28, %v193_v24  ;;  %854 = vperm.xlu1 %1170, %v128_v25   ;;  %849 = vperm.xlu0 %1169, %v127_v26   ;;  %v212_v25 = vld [vmem:[%s2468_s1 + $0x248] sm:$0xff]  ;;  %v211_v26 = vld [vmem:[%s2468_s1 + $0x240] sm:$0xff] }
  0xec   :  { %1091 = vst.msk [vmem:[%s2469_s2 + $0x1b8] sm:$0xff] %vm1035_vm0, %v962_v29  ;;  %1090 = vst.msk [vmem:[%s2469_s2 + $0x1b0] sm:$0xff] %vm1035_vm0, %v961_v30 }
  0xed   :  { %v555_v35 = vpop.permute.xlu1 %554  ;;  %v550_v36 = vpop.permute.xlu0 %549 }
  0xee   :  { %v964_v37 = vmul.f32 %v555_v35, %v196_v31  ;;  %v963_v38 = vmul.f32 %v550_v36, %v195_v32  ;;  %864 = vperm.xlu1 %1170, %v130_v33   ;;  %859 = vperm.xlu0 %1169, %v129_v34   ;;  %v214_v31 = vld [vmem:[%s2468_s1 + $0x258] sm:$0xff]  ;;  %v213_v32 = vld [vmem:[%s2468_s1 + $0x250] sm:$0xff] }
  0xf0   :  { %1093 = vst.msk [vmem:[%s2469_s2 + $0x1c8] sm:$0xff] %vm1035_vm0, %v964_v37  ;;  %1092 = vst.msk [vmem:[%s2469_s2 + $0x1c0] sm:$0xff] %vm1035_vm0, %v963_v38  ;;  %v216_v37 = vld [vmem:[%s2468_s1 + $0x268] sm:$0xff]  ;;  %v215_v38 = vld [vmem:[%s2468_s1 + $0x260] sm:$0xff] }
  0xf1   :  { %v565_v43 = vpop.permute.xlu1 %564  ;;  %v560_v44 = vpop.permute.xlu0 %559 }
  0xf2   :  { %v966_v45 = vmul.f32 %v565_v43, %v198_v39  ;;  %v965_v46 = vmul.f32 %v560_v44, %v197_v40  ;;  %874 = vperm.xlu1 %1170, %v132_v41   ;;  %869 = vperm.xlu0 %1169, %v131_v42   ;;  %v218_v43 = vld [vmem:[%s2468_s1 + $0x278] sm:$0xff]  ;;  %v217_v44 = vld [vmem:[%s2468_s1 + $0x270] sm:$0xff] }
  0xf4   :  { %1095 = vst.msk [vmem:[%s2469_s2 + $0x1d8] sm:$0xff] %vm1035_vm0, %v966_v45  ;;  %1094 = vst.msk [vmem:[%s2469_s2 + $0x1d0] sm:$0xff] %vm1035_vm0, %v965_v46 }
  0xf5   :  { %v575_v51 = vpop.permute.xlu1 %574  ;;  %v570_v52 = vpop.permute.xlu0 %569 }
  0xf6   :  { %v968_v53 = vmul.f32 %v575_v51, %v200_v47  ;;  %v967_v54 = vmul.f32 %v570_v52, %v199_v48  ;;  %884 = vperm.xlu1 %1170, %v134_v49   ;;  %879 = vperm.xlu0 %1169, %v133_v50   ;;  %v220_v49 = vld [vmem:[%s2468_s1 + $0x288] sm:$0xff]  ;;  %v219_v50 = vld [vmem:[%s2468_s1 + $0x280] sm:$0xff] }
  0xf8   :  { %1097 = vst.msk [vmem:[%s2469_s2 + $0x1e8] sm:$0xff] %vm1035_vm0, %v968_v53  ;;  %1096 = vst.msk [vmem:[%s2469_s2 + $0x1e0] sm:$0xff] %vm1035_vm0, %v967_v54 }
  0xf9   :  { %v585_v59 = vpop.permute.xlu1 %584  ;;  %v580_v60 = vpop.permute.xlu0 %579 }
  0xfa   :  { %v970_v61 = vmul.f32 %v585_v59, %v202_v55  ;;  %v969_v62 = vmul.f32 %v580_v60, %v201_v56  ;;  %894 = vperm.xlu1 %1170, %v136_v57   ;;  %889 = vperm.xlu0 %1169, %v135_v58   ;;  %v222_v55 = vld [vmem:[%s2468_s1 + $0x298] sm:$0xff]  ;;  %v221_v56 = vld [vmem:[%s2468_s1 + $0x290] sm:$0xff] }
  0xfc   :  { %1099 = vst.msk [vmem:[%s2469_s2 + $0x1f8] sm:$0xff] %vm1035_vm0, %v970_v61  ;;  %1098 = vst.msk [vmem:[%s2469_s2 + $0x1f0] sm:$0xff] %vm1035_vm0, %v969_v62  ;;  %v224_v61 = vld [vmem:[%s2468_s1 + $0x2a8] sm:$0xff]  ;;  %v223_v62 = vld [vmem:[%s2468_s1 + $0x2a0] sm:$0xff] }
  0xfd   :  { %v595_v3 = vpop.permute.xlu1 %594  ;;  %v590_v4 = vpop.permute.xlu0 %589 }
  0xfe   :  { %v972_v5 = vmul.f32 %v595_v3, %v204_v63  ;;  %v971_v6 = vmul.f32 %v590_v4, %v203_v0  ;;  %904 = vperm.xlu1 %1170, %v138_v1   ;;  %899 = vperm.xlu0 %1169, %v137_v2   ;;  %v226_v3 = vld [vmem:[%s2468_s1 + $0x2b8] sm:$0xff]  ;;  %v225_v4 = vld [vmem:[%s2468_s1 + $0x2b0] sm:$0xff] }
 0x100   :  { %1101 = vst.msk [vmem:[%s2469_s2 + $0x208] sm:$0xff] %vm1035_vm0, %v972_v5  ;;  %1100 = vst.msk [vmem:[%s2469_s2 + $0x200] sm:$0xff] %vm1035_vm0, %v971_v6 }
 0x101   :  { %v605_v9 = vpop.permute.xlu1 %604  ;;  %v600_v10 = vpop.permute.xlu0 %599 }
 0x102   :  { %v974_v11 = vmul.f32 %v605_v9, %v206_v7  ;;  %v973_v12 = vmul.f32 %v600_v10, %v205_v8  ;;  %v228_v9 = vld [vmem:[%s2468_s1 + $0x2c8] sm:$0xff]  ;;  %v227_v10 = vld [vmem:[%s2468_s1 + $0x2c0] sm:$0xff] }
 0x104   :  { %1103 = vst.msk [vmem:[%s2469_s2 + $0x218] sm:$0xff] %vm1035_vm0, %v974_v11  ;;  %1102 = vst.msk [vmem:[%s2469_s2 + $0x210] sm:$0xff] %vm1035_vm0, %v973_v12 }
 0x105   :  { %v615_v15 = vpop.permute.xlu1 %614  ;;  %v610_v16 = vpop.permute.xlu0 %609 }
 0x106   :  { %v976_v17 = vmul.f32 %v615_v15, %v208_v13  ;;  %v975_v18 = vmul.f32 %v610_v16, %v207_v14  ;;  %v230_v15 = vld [vmem:[%s2468_s1 + $0x2d8] sm:$0xff]  ;;  %v229_v16 = vld [vmem:[%s2468_s1 + $0x2d0] sm:$0xff] }
 0x108   :  { %1105 = vst.msk [vmem:[%s2469_s2 + $0x228] sm:$0xff] %vm1035_vm0, %v976_v17  ;;  %1104 = vst.msk [vmem:[%s2469_s2 + $0x220] sm:$0xff] %vm1035_vm0, %v975_v18 }
 0x109   :  { %v625_v21 = vpop.permute.xlu1 %624  ;;  %v620_v22 = vpop.permute.xlu0 %619 }
 0x10a   :  { %v978_v23 = vmul.f32 %v625_v21, %v210_v19  ;;  %v977_v24 = vmul.f32 %v620_v22, %v209_v20  ;;  %v232_v21 = vld [vmem:[%s2468_s1 + $0x2e8] sm:$0xff]  ;;  %v231_v22 = vld [vmem:[%s2468_s1 + $0x2e0] sm:$0xff] }
 0x10c   :  { %1107 = vst.msk [vmem:[%s2469_s2 + $0x238] sm:$0xff] %vm1035_vm0, %v978_v23  ;;  %1106 = vst.msk [vmem:[%s2469_s2 + $0x230] sm:$0xff] %vm1035_vm0, %v977_v24 }
 0x10d   :  { %v635_v27 = vpop.permute.xlu1 %634  ;;  %v630_v28 = vpop.permute.xlu0 %629 }
 0x10e   :  { %v980_v29 = vmul.f32 %v635_v27, %v212_v25  ;;  %v979_v30 = vmul.f32 %v630_v28, %v211_v26  ;;  %v234_v27 = vld [vmem:[%s2468_s1 + $0x2f8] sm:$0xff]  ;;  %v233_v28 = vld [vmem:[%s2468_s1 + $0x2f0] sm:$0xff] }
 0x110   :  { %1109 = vst.msk [vmem:[%s2469_s2 + $0x248] sm:$0xff] %vm1035_vm0, %v980_v29  ;;  %1108 = vst.msk [vmem:[%s2469_s2 + $0x240] sm:$0xff] %vm1035_vm0, %v979_v30 }
 0x111   :  { %v645_v33 = vpop.permute.xlu1 %644  ;;  %v640_v34 = vpop.permute.xlu0 %639 }
 0x112   :  { %v982_v35 = vmul.f32 %v645_v33, %v214_v31  ;;  %v981_v36 = vmul.f32 %v640_v34, %v213_v32  ;;  %v236_v33 = vld [vmem:[%s2468_s1 + $0x308] sm:$0xff]  ;;  %v235_v34 = vld [vmem:[%s2468_s1 + $0x300] sm:$0xff] }
 0x114   :  { %1111 = vst.msk [vmem:[%s2469_s2 + $0x258] sm:$0xff] %vm1035_vm0, %v982_v35  ;;  %1110 = vst.msk [vmem:[%s2469_s2 + $0x250] sm:$0xff] %vm1035_vm0, %v981_v36 }
 0x115   :  { %v655_v39 = vpop.permute.xlu1 %654  ;;  %v650_v40 = vpop.permute.xlu0 %649 }
 0x116   :  { %v984_v41 = vmul.f32 %v655_v39, %v216_v37  ;;  %v983_v42 = vmul.f32 %v650_v40, %v215_v38  ;;  %v238_v39 = vld [vmem:[%s2468_s1 + $0x318] sm:$0xff]  ;;  %v237_v40 = vld [vmem:[%s2468_s1 + $0x310] sm:$0xff] }
 0x118   :  { %1113 = vst.msk [vmem:[%s2469_s2 + $0x268] sm:$0xff] %vm1035_vm0, %v984_v41  ;;  %1112 = vst.msk [vmem:[%s2469_s2 + $0x260] sm:$0xff] %vm1035_vm0, %v983_v42 }
 0x119   :  { %v665_v45 = vpop.permute.xlu1 %664  ;;  %v660_v46 = vpop.permute.xlu0 %659 }
 0x11a   :  { %v986_v47 = vmul.f32 %v665_v45, %v218_v43  ;;  %v985_v48 = vmul.f32 %v660_v46, %v217_v44  ;;  %v240_v45 = vld [vmem:[%s2468_s1 + $0x328] sm:$0xff]  ;;  %v239_v46 = vld [vmem:[%s2468_s1 + $0x320] sm:$0xff] }
 0x11c   :  { %1115 = vst.msk [vmem:[%s2469_s2 + $0x278] sm:$0xff] %vm1035_vm0, %v986_v47  ;;  %1114 = vst.msk [vmem:[%s2469_s2 + $0x270] sm:$0xff] %vm1035_vm0, %v985_v48 }
 0x11d   :  { %v675_v51 = vpop.permute.xlu1 %674  ;;  %v670_v52 = vpop.permute.xlu0 %669 }
 0x11e   :  { %v988_v53 = vmul.f32 %v675_v51, %v220_v49  ;;  %v987_v54 = vmul.f32 %v670_v52, %v219_v50  ;;  %v242_v51 = vld [vmem:[%s2468_s1 + $0x338] sm:$0xff]  ;;  %v241_v52 = vld [vmem:[%s2468_s1 + $0x330] sm:$0xff] }
 0x120   :  { %1117 = vst.msk [vmem:[%s2469_s2 + $0x288] sm:$0xff] %vm1035_vm0, %v988_v53  ;;  %1116 = vst.msk [vmem:[%s2469_s2 + $0x280] sm:$0xff] %vm1035_vm0, %v987_v54 }
 0x121   :  { %v685_v57 = vpop.permute.xlu1 %684  ;;  %v680_v58 = vpop.permute.xlu0 %679 }
 0x122   :  { %v990_v59 = vmul.f32 %v685_v57, %v222_v55  ;;  %v989_v60 = vmul.f32 %v680_v58, %v221_v56  ;;  %v244_v57 = vld [vmem:[%s2468_s1 + $0x348] sm:$0xff]  ;;  %v243_v58 = vld [vmem:[%s2468_s1 + $0x340] sm:$0xff] }
 0x124   :  { %1119 = vst.msk [vmem:[%s2469_s2 + $0x298] sm:$0xff] %vm1035_vm0, %v990_v59  ;;  %1118 = vst.msk [vmem:[%s2469_s2 + $0x290] sm:$0xff] %vm1035_vm0, %v989_v60 }
 0x125   :  { %v695_v63 = vpop.permute.xlu1 %694  ;;  %v690_v0 = vpop.permute.xlu0 %689 }
 0x126   :  { %v992_v1 = vmul.f32 %v695_v63, %v224_v61  ;;  %v991_v2 = vmul.f32 %v690_v0, %v223_v62  ;;  %v246_v63 = vld [vmem:[%s2468_s1 + $0x358] sm:$0xff]  ;;  %v245_v0 = vld [vmem:[%s2468_s1 + $0x350] sm:$0xff] }
 0x128   :  { %1121 = vst.msk [vmem:[%s2469_s2 + $0x2a8] sm:$0xff] %vm1035_vm0, %v992_v1  ;;  %1120 = vst.msk [vmem:[%s2469_s2 + $0x2a0] sm:$0xff] %vm1035_vm0, %v991_v2 }
 0x129   :  { %v705_v5 = vpop.permute.xlu1 %704  ;;  %v700_v6 = vpop.permute.xlu0 %699 }
 0x12a   :  { %v994_v7 = vmul.f32 %v705_v5, %v226_v3  ;;  %v993_v8 = vmul.f32 %v700_v6, %v225_v4  ;;  %v248_v5 = vld [vmem:[%s2468_s1 + $0x368] sm:$0xff]  ;;  %v247_v6 = vld [vmem:[%s2468_s1 + $0x360] sm:$0xff] }
 0x12c   :  { %1123 = vst.msk [vmem:[%s2469_s2 + $0x2b8] sm:$0xff] %vm1035_vm0, %v994_v7  ;;  %1122 = vst.msk [vmem:[%s2469_s2 + $0x2b0] sm:$0xff] %vm1035_vm0, %v993_v8 }
 0x12d   :  { %v715_v11 = vpop.permute.xlu1 %714  ;;  %v710_v12 = vpop.permute.xlu0 %709 }
 0x12e   :  { %v996_v13 = vmul.f32 %v715_v11, %v228_v9  ;;  %v995_v14 = vmul.f32 %v710_v12, %v227_v10  ;;  %v250_v11 = vld [vmem:[%s2468_s1 + $0x378] sm:$0xff]  ;;  %v249_v12 = vld [vmem:[%s2468_s1 + $0x370] sm:$0xff] }
 0x130   :  { %1125 = vst.msk [vmem:[%s2469_s2 + $0x2c8] sm:$0xff] %vm1035_vm0, %v996_v13  ;;  %1124 = vst.msk [vmem:[%s2469_s2 + $0x2c0] sm:$0xff] %vm1035_vm0, %v995_v14 }
 0x131   :  { %v725_v17 = vpop.permute.xlu1 %724  ;;  %v720_v18 = vpop.permute.xlu0 %719 }
 0x132   :  { %v998_v19 = vmul.f32 %v725_v17, %v230_v15  ;;  %v997_v20 = vmul.f32 %v720_v18, %v229_v16  ;;  %v252_v17 = vld [vmem:[%s2468_s1 + $0x388] sm:$0xff]  ;;  %v251_v18 = vld [vmem:[%s2468_s1 + $0x380] sm:$0xff] }
 0x134   :  { %1127 = vst.msk [vmem:[%s2469_s2 + $0x2d8] sm:$0xff] %vm1035_vm0, %v998_v19  ;;  %1126 = vst.msk [vmem:[%s2469_s2 + $0x2d0] sm:$0xff] %vm1035_vm0, %v997_v20 }
 0x135   :  { %v735_v23 = vpop.permute.xlu1 %734  ;;  %v730_v24 = vpop.permute.xlu0 %729 }
 0x136   :  { %v1000_v25 = vmul.f32 %v735_v23, %v232_v21  ;;  %v999_v26 = vmul.f32 %v730_v24, %v231_v22  ;;  %v254_v23 = vld [vmem:[%s2468_s1 + $0x398] sm:$0xff]  ;;  %v253_v24 = vld [vmem:[%s2468_s1 + $0x390] sm:$0xff] }
 0x138   :  { %1129 = vst.msk [vmem:[%s2469_s2 + $0x2e8] sm:$0xff] %vm1035_vm0, %v1000_v25  ;;  %1128 = vst.msk [vmem:[%s2469_s2 + $0x2e0] sm:$0xff] %vm1035_vm0, %v999_v26 }
 0x139   :  { %v745_v29 = vpop.permute.xlu1 %744  ;;  %v740_v30 = vpop.permute.xlu0 %739 }
 0x13a   :  { %v1002_v31 = vmul.f32 %v745_v29, %v234_v27  ;;  %v1001_v32 = vmul.f32 %v740_v30, %v233_v28  ;;  %v256_v29 = vld [vmem:[%s2468_s1 + $0x3a8] sm:$0xff]  ;;  %v255_v30 = vld [vmem:[%s2468_s1 + $0x3a0] sm:$0xff] }
 0x13c   :  { %1131 = vst.msk [vmem:[%s2469_s2 + $0x2f8] sm:$0xff] %vm1035_vm0, %v1002_v31  ;;  %1130 = vst.msk [vmem:[%s2469_s2 + $0x2f0] sm:$0xff] %vm1035_vm0, %v1001_v32 }
 0x13d   :  { %v755_v35 = vpop.permute.xlu1 %754  ;;  %v750_v36 = vpop.permute.xlu0 %749 }
 0x13e   :  { %v1004_v37 = vmul.f32 %v755_v35, %v236_v33  ;;  %v1003_v38 = vmul.f32 %v750_v36, %v235_v34  ;;  %v258_v35 = vld [vmem:[%s2468_s1 + $0x3b8] sm:$0xff]  ;;  %v257_v36 = vld [vmem:[%s2468_s1 + $0x3b0] sm:$0xff] }
 0x140   :  { %1133 = vst.msk [vmem:[%s2469_s2 + $0x308] sm:$0xff] %vm1035_vm0, %v1004_v37  ;;  %1132 = vst.msk [vmem:[%s2469_s2 + $0x300] sm:$0xff] %vm1035_vm0, %v1003_v38 }
 0x141   :  { %v765_v41 = vpop.permute.xlu1 %764  ;;  %v760_v42 = vpop.permute.xlu0 %759 }
 0x142   :  { %v1006_v43 = vmul.f32 %v765_v41, %v238_v39  ;;  %v1005_v44 = vmul.f32 %v760_v42, %v237_v40  ;;  %v260_v41 = vld [vmem:[%s2468_s1 + $0x3c8] sm:$0xff]  ;;  %v259_v42 = vld [vmem:[%s2468_s1 + $0x3c0] sm:$0xff] }
 0x144   :  { %1135 = vst.msk [vmem:[%s2469_s2 + $0x318] sm:$0xff] %vm1035_vm0, %v1006_v43  ;;  %1134 = vst.msk [vmem:[%s2469_s2 + $0x310] sm:$0xff] %vm1035_vm0, %v1005_v44 }
 0x145   :  { %v775_v47 = vpop.permute.xlu1 %774  ;;  %v770_v48 = vpop.permute.xlu0 %769 }
 0x146   :  { %v1008_v49 = vmul.f32 %v775_v47, %v240_v45  ;;  %v1007_v50 = vmul.f32 %v770_v48, %v239_v46  ;;  %v262_v47 = vld [vmem:[%s2468_s1 + $0x3d8] sm:$0xff]  ;;  %v261_v48 = vld [vmem:[%s2468_s1 + $0x3d0] sm:$0xff] }
 0x148   :  { %1137 = vst.msk [vmem:[%s2469_s2 + $0x328] sm:$0xff] %vm1035_vm0, %v1008_v49  ;;  %1136 = vst.msk [vmem:[%s2469_s2 + $0x320] sm:$0xff] %vm1035_vm0, %v1007_v50 }
 0x149   :  { %v785_v53 = vpop.permute.xlu1 %784  ;;  %v780_v54 = vpop.permute.xlu0 %779 }
 0x14a   :  { %v1010_v55 = vmul.f32 %v785_v53, %v242_v51  ;;  %v1009_v56 = vmul.f32 %v780_v54, %v241_v52  ;;  %v264_v53 = vld [vmem:[%s2468_s1 + $0x3e8] sm:$0xff]  ;;  %v263_v54 = vld [vmem:[%s2468_s1 + $0x3e0] sm:$0xff] }
 0x14c   :  { %1139 = vst.msk [vmem:[%s2469_s2 + $0x338] sm:$0xff] %vm1035_vm0, %v1010_v55  ;;  %1138 = vst.msk [vmem:[%s2469_s2 + $0x330] sm:$0xff] %vm1035_vm0, %v1009_v56 }
 0x14d   :  { %v795_v59 = vpop.permute.xlu1 %794  ;;  %v790_v60 = vpop.permute.xlu0 %789 }
 0x14e   :  { %v1012_v61 = vmul.f32 %v795_v59, %v244_v57  ;;  %v1011_v62 = vmul.f32 %v790_v60, %v243_v58  ;;  %v266_v59 = vld [vmem:[%s2468_s1 + $0x3f8] sm:$0xff]  ;;  %v265_v60 = vld [vmem:[%s2468_s1 + $0x3f0] sm:$0xff] }
 0x150   :  { %1141 = vst.msk [vmem:[%s2469_s2 + $0x348] sm:$0xff] %vm1035_vm0, %v1012_v61  ;;  %1140 = vst.msk [vmem:[%s2469_s2 + $0x340] sm:$0xff] %vm1035_vm0, %v1011_v62 }
 0x151   :  { %v805_v1 = vpop.permute.xlu1 %804  ;;  %v800_v2 = vpop.permute.xlu0 %799 }
 0x152   :  { %v1014_v3 = vmul.f32 %v805_v1, %v246_v63  ;;  %v1013_v4 = vmul.f32 %v800_v2, %v245_v0 }
 0x154   :  { %1143 = vst.msk [vmem:[%s2469_s2 + $0x358] sm:$0xff] %vm1035_vm0, %v1014_v3  ;;  %1142 = vst.msk [vmem:[%s2469_s2 + $0x350] sm:$0xff] %vm1035_vm0, %v1013_v4 }
 0x155   :  { %v815_v7 = vpop.permute.xlu1 %814  ;;  %v810_v8 = vpop.permute.xlu0 %809 }
 0x156   :  { %v1016_v9 = vmul.f32 %v815_v7, %v248_v5  ;;  %v1015_v10 = vmul.f32 %v810_v8, %v247_v6 }
 0x158   :  { %1145 = vst.msk [vmem:[%s2469_s2 + $0x368] sm:$0xff] %vm1035_vm0, %v1016_v9  ;;  %1144 = vst.msk [vmem:[%s2469_s2 + $0x360] sm:$0xff] %vm1035_vm0, %v1015_v10 }
 0x159   :  { %v825_v13 = vpop.permute.xlu1 %824  ;;  %v820_v14 = vpop.permute.xlu0 %819 }
 0x15a   :  { %v1018_v15 = vmul.f32 %v825_v13, %v250_v11  ;;  %v1017_v16 = vmul.f32 %v820_v14, %v249_v12 }
 0x15c   :  { %1147 = vst.msk [vmem:[%s2469_s2 + $0x378] sm:$0xff] %vm1035_vm0, %v1018_v15  ;;  %1146 = vst.msk [vmem:[%s2469_s2 + $0x370] sm:$0xff] %vm1035_vm0, %v1017_v16 }
 0x15d   :  { %v835_v19 = vpop.permute.xlu1 %834  ;;  %v830_v20 = vpop.permute.xlu0 %829 }
 0x15e   :  { %v1020_v21 = vmul.f32 %v835_v19, %v252_v17  ;;  %v1019_v22 = vmul.f32 %v830_v20, %v251_v18 }
 0x160   :  { %1149 = vst.msk [vmem:[%s2469_s2 + $0x388] sm:$0xff] %vm1035_vm0, %v1020_v21  ;;  %1148 = vst.msk [vmem:[%s2469_s2 + $0x380] sm:$0xff] %vm1035_vm0, %v1019_v22 }
 0x161   :  { %v845_v25 = vpop.permute.xlu1 %844  ;;  %v840_v26 = vpop.permute.xlu0 %839 }
 0x162   :  { %v1022_v27 = vmul.f32 %v845_v25, %v254_v23  ;;  %v1021_v28 = vmul.f32 %v840_v26, %v253_v24 }
 0x164   :  { %1151 = vst.msk [vmem:[%s2469_s2 + $0x398] sm:$0xff] %vm1035_vm0, %v1022_v27  ;;  %1150 = vst.msk [vmem:[%s2469_s2 + $0x390] sm:$0xff] %vm1035_vm0, %v1021_v28 }
 0x165   :  { %v855_v31 = vpop.permute.xlu1 %854  ;;  %v850_v32 = vpop.permute.xlu0 %849 }
 0x166   :  { %v1024_v33 = vmul.f32 %v855_v31, %v256_v29  ;;  %v1023_v34 = vmul.f32 %v850_v32, %v255_v30 }
 0x168   :  { %1153 = vst.msk [vmem:[%s2469_s2 + $0x3a8] sm:$0xff] %vm1035_vm0, %v1024_v33  ;;  %1152 = vst.msk [vmem:[%s2469_s2 + $0x3a0] sm:$0xff] %vm1035_vm0, %v1023_v34 }
 0x169   :  { %v865_v37 = vpop.permute.xlu1 %864  ;;  %v860_v38 = vpop.permute.xlu0 %859 }
 0x16a   :  { %v1026_v39 = vmul.f32 %v865_v37, %v258_v35  ;;  %v1025_v40 = vmul.f32 %v860_v38, %v257_v36 }
 0x16c   :  { %1155 = vst.msk [vmem:[%s2469_s2 + $0x3b8] sm:$0xff] %vm1035_vm0, %v1026_v39  ;;  %1154 = vst.msk [vmem:[%s2469_s2 + $0x3b0] sm:$0xff] %vm1035_vm0, %v1025_v40 }
 0x16d   :  { %v875_v43 = vpop.permute.xlu1 %874  ;;  %v870_v44 = vpop.permute.xlu0 %869 }
 0x16e   :  { %v1028_v45 = vmul.f32 %v875_v43, %v260_v41  ;;  %v1027_v46 = vmul.f32 %v870_v44, %v259_v42 }
 0x170   :  { %1157 = vst.msk [vmem:[%s2469_s2 + $0x3c8] sm:$0xff] %vm1035_vm0, %v1028_v45  ;;  %1156 = vst.msk [vmem:[%s2469_s2 + $0x3c0] sm:$0xff] %vm1035_vm0, %v1027_v46 }
 0x171   :  { %v885_v49 = vpop.permute.xlu1 %884  ;;  %v880_v50 = vpop.permute.xlu0 %879 }
 0x172   :  { %v1030_v51 = vmul.f32 %v885_v49, %v262_v47  ;;  %v1029_v52 = vmul.f32 %v880_v50, %v261_v48 }
 0x174   :  { %1159 = vst.msk [vmem:[%s2469_s2 + $0x3d8] sm:$0xff] %vm1035_vm0, %v1030_v51  ;;  %1158 = vst.msk [vmem:[%s2469_s2 + $0x3d0] sm:$0xff] %vm1035_vm0, %v1029_v52 }
 0x175   :  { %v895_v55 = vpop.permute.xlu1 %894  ;;  %v890_v56 = vpop.permute.xlu0 %889 }
 0x176   :  { %v1032_v57 = vmul.f32 %v895_v55, %v264_v53  ;;  %v1031_v58 = vmul.f32 %v890_v56, %v263_v54 }
 0x178   :  { %1161 = vst.msk [vmem:[%s2469_s2 + $0x3e8] sm:$0xff] %vm1035_vm0, %v1032_v57  ;;  %1160 = vst.msk [vmem:[%s2469_s2 + $0x3e0] sm:$0xff] %vm1035_vm0, %v1031_v58 }
 0x179   :  { %v905_v61 = vpop.permute.xlu1 %904  ;;  %v900_v62 = vpop.permute.xlu0 %899 }
 0x17a   :  { %v1034_v63 = vmul.f32 %v905_v61, %v266_v59  ;;  %v1033_v0 = vmul.f32 %v900_v62, %v265_v60 }
 0x17c   :  { %1163 = vst.msk [vmem:[%s2469_s2 + $0x3f8] sm:$0xff] %vm1035_vm0, %v1034_v63  ;;  %1162 = vst.msk [vmem:[%s2469_s2 + $0x3f0] sm:$0xff] %vm1035_vm0, %v1033_v0 }

</bundles_post_ra>
